<compile_context>
chip_gen: v7x
topology: tpu7x:2x2x1
jax: 0.10.0
libtpu: 0.0.40
codegen_flags: <defaults>
</compile_context>

<pallas_src>
import functools

import jax
import jax.numpy as jnp
from jax import lax
from jax.experimental import pallas as pl
from jax.experimental.pallas import tpu as pltpu


def _round_up(x, m):
    return ((x + m - 1) // m) * m


def _tpu_generation():
    try:
        kind = jax.devices()[0].device_kind.lower()
    except Exception:
        return None
    for tags, gen in ((("v7", "7x"), 7), (("v6",), 6), (("v5",), 5), (("v4",), 4)):
        if any(t in kind for t in tags):
            return gen
    return None


def _vmem_estimate_bytes(bb, l_pad, e, k, f_pad, lt_p):
    """Rough VMEM footprint for one grid step (double-buffered inputs + temps)."""
    m = bb * lt_p
    emb_blk = bb * l_pad * e * 2          # bf16 emb tile
    w_blk = k * f_pad * 2                 # bf16 packed weights (resident)
    small = 2 * f_pad * 4                 # bias + limits rows
    out_blk = bb * f_pad * 4              # f32 pooled output block
    lhs = m * k * 2                       # bf16 im2col LHS (in-kernel temp)
    acc = m * f_pad * 4                   # f32 matmul result / epilogue temp
    return int(1.5 * (2 * (emb_blk + w_blk + small + out_blk) + lhs + acc + emb_blk))


def _fused_conv_kernel(emb_ref, w_ref, b_ref, lim_ref, o_ref, *, n_max, lt_p):
    # emb_ref: (bb, L_pad, E)      bf16  zero-padded embedded tokens (batch block)
    # w_ref:   (n_max*E, F_pad)    bf16  packed conv weights, all filter heights
    # b_ref:   (1, F_pad)          f32   packed conv biases
    # lim_ref: (1, F_pad)          i32   last valid time position per filter column
    # o_ref:   (1, bb, F_pad)      f32   max-over-time pooled ReLU(conv) output
    bb, _, e = emb_ref.shape
    f_pad = w_ref.shape[1]
    m = bb * lt_p

    emb = emb_ref[...]                                          # (bb, L_pad, E) bf16

    # im2col: concatenate the n_max shifted windows along the feature axis so the
    # whole convolution becomes ONE MXU dot with K = n_max*E.
    taps = [emb[:, i:i + lt_p, :] for i in range(n_max)]        # static unroll
    lhs = jnp.concatenate(taps, axis=-1).reshape(m, n_max * e)  # (m, n_max*E) bf16
    acc = jnp.dot(lhs, w_ref[...], preferred_element_type=jnp.float32)  # (m, F_pad)

    # bias + ReLU epilogue in f32.
    acc = jnp.maximum(acc + b_ref[...], 0.0)

    # Zero out invalid ("valid-conv" overhang / padded-column) time positions.
    # Exact because ReLU guarantees the true max is >= 0.
    acc = acc.reshape(bb, lt_p, f_pad)
    t_idx = lax.broadcasted_iota(jnp.int32, (bb, lt_p, f_pad), 1)
    lim = lim_ref[...].reshape(1, 1, f_pad)
    acc = jnp.where(t_idx <= lim, acc, 0.0)

    # AdaptiveMaxPool2d(1): max over time, one dense (bb, F_pad) store.
    o_ref[0] = jnp.max(acc, axis=1)


def fused_conv_relu_maxpool(emb, w2d, b_packed, limits, *, n_max, lt_p, bb,
                            vmem_limit_bytes=None):
    """emb: (B_pad, L_pad, E) bf16 -> (B_pad, F_pad) f32 pooled conv features."""
    b_pad, l_pad, e = emb.shape
    k, f_pad = w2d.shape
    nblk = b_pad // bb
    out = pl.pallas_call(
        functools.partial(_fused_conv_kernel, n_max=n_max, lt_p=lt_p),
        out_shape=jax.ShapeDtypeStruct((nblk, bb, f_pad), jnp.float32),
        grid=(nblk,),
        in_specs=[
            pl.BlockSpec((bb, l_pad, e), lambda bi: (bi, 0, 0)),   # emb batch block
            pl.BlockSpec((k, f_pad), lambda bi: (0, 0)),           # packed weights (resident)
            pl.BlockSpec((1, f_pad), lambda bi: (0, 0)),           # packed bias (resident)
            pl.BlockSpec((1, f_pad), lambda bi: (0, 0)),           # valid-time limits (resident)
        ],
        out_specs=pl.BlockSpec((1, bb, f_pad), lambda bi: (bi, 0, 0)),  # lane-dense output
        compiler_params=pltpu.CompilerParams(
            dimension_semantics=("parallel",),
            vmem_limit_bytes=vmem_limit_bytes),
    )(emb, w2d, b_packed, limits)
    return out.reshape(b_pad, f_pad)


def multitask_convnet_forward(x_tokens, embed_matrix, conv_weights, conv_biases,
                              filter_list, *, target_m=2048):
    """Forward pass matching MultitaskConvNet.forward (inference mode)."""
    B, L = x_tokens.shape
    E = embed_matrix.shape[1]
    F = conv_weights[0].shape[0]
    n_min, n_max = min(filter_list), max(filter_list)
    F_total = F * len(filter_list)
    F_pad = _round_up(F_total, 128)              # lane-dense output width
    lt_p = _round_up(L - n_min + 1, 16)          # time positions, bf16 sublane-aligned
    L_pad = _round_up(lt_p + n_max - 1, 16)      # padded sequence length read by kernel
    K = n_max * E                                # folded matmul contraction depth

    # Generation-aware sizing.
    gen = _tpu_generation()
    dual_tc = gen not in (5, 6)                  # v7x (and unknown/older megacore) only
    vmem_budget = (64 << 20) if gen in (5, 6) else (24 << 20)

    # Batch block: fill the MXU M dimension (~target_m rows) within the VMEM budget.
    bb = max(1, target_m // lt_p)
    bb = min(bb, B)
    if dual_tc and B >= 2:
        bb = min(bb, -(-B // 2))                 # keep >= 2 grid steps for 2 TensorCores
    while bb > 1 and _vmem_estimate_bytes(bb, L_pad, E, K, F_pad, lt_p) > vmem_budget:
        bb = max(1, bb // 2)
    if bb >= 8:
        bb = (bb // 8) * 8                       # sublane-dense output block
    B_pad = _round_up(B, bb)

    est = _vmem_estimate_bytes(bb, L_pad, E, K, F_pad, lt_p)
    vmem_limit = None
    if est > (12 << 20):
        cap = (100 << 20) if gen in (5, 6) else (56 << 20)
        vmem_limit = min(cap, est + (8 << 20))

    # --- glue in plain JAX ----------------------------------------------------
    # TODO(synk): embedding gather kept as a plain-JAX take (bf16 table to halve the
    # materialized intermediate); for production sizes fuse it into the kernel via
    # scalar-prefetched token ids to avoid the HBM round trip entirely.
    emb = jnp.take(embed_matrix.astype(jnp.bfloat16), x_tokens, axis=0)   # (B, L, E) bf16
    emb = jnp.pad(emb, ((0, B_pad - B), (0, L_pad - L), (0, 0)))

    # Pack every filter height into one weight / bias / limits set.
    w_packed = jnp.zeros((n_max, E, F_pad), jnp.float32)
    b_packed = jnp.zeros((1, F_pad), jnp.float32)
    limits = jnp.full((1, F_pad), -1, jnp.int32)                 # -1 => always invalid
    for g, (n, w, b) in enumerate(zip(filter_list, conv_weights, conv_biases)):
        # PyTorch Conv2d weight (F, 1, n, E) -> kernel layout (n, E, F)
        w_packed = w_packed.at[:n, :, g * F:(g + 1) * F].set(
            jnp.transpose(w[:, 0], (1, 2, 0)))
        b_packed = b_packed.at[0, g * F:(g + 1) * F].set(b)
        limits = limits.at[0, g * F:(g + 1) * F].set(L - n)      # last valid position
    w2d = w_packed.reshape(K, F_pad).astype(jnp.bfloat16)        # tap-major (i, e) rows

    out = fused_conv_relu_maxpool(emb, w2d, b_packed, limits,
                                  n_max=n_max, lt_p=lt_p, bb=bb,
                                  vmem_limit_bytes=vmem_limit)
    # TODO(synk): nn.Dropout treated as inference-mode identity (deterministic kernel).
    return out[:B, :F_total]                                     # == output.view(b, -1)


def _reference(x_tokens, embed_matrix, conv_weights, conv_biases, filter_list):
    """Pure-JAX reference; inputs rounded through bf16 to match the kernel's MXU path."""
    emb = jnp.take(embed_matrix, x_tokens, axis=0)
    emb = emb.astype(jnp.bfloat16).astype(jnp.float32)           # (B, L, E)
    B, L, E = emb.shape
    outs = []
    for n, w, b in zip(filter_list, conv_weights, conv_biases):
        w_q = w[:, 0].astype(jnp.bfloat16).astype(jnp.float32)   # (F, n, E)
        lt = L - n + 1
        windows = jnp.stack([emb[:, i:i + lt, :] for i in range(n)], axis=2)  # (B,lt,n,E)
        s = jnp.einsum('blne,fne->blf', windows, w_q,
                       preferred_element_type=jnp.float32) + b               # (B,lt,F)
        s = jnp.maximum(s, 0.0)
        outs.append(jnp.max(s, axis=1))                                      # (B,F)
    return jnp.concatenate(outs, axis=1)


if __name__ == "__main__":
    # Small deterministic config consistent with the module.
    B, L, E = 2, 16, 32          # batch, sequence length, embedding dim
    vocab = 50
    num_filters = 8
    filter_list = [3, 4, 5]

    key = jax.random.PRNGKey(0)
    keys = jax.random.split(key, 2 + 2 * len(filter_list))
    k_emb, k_tok = keys[0], keys[1]
    k_params = keys[2:]

    embed_matrix = jax.random.normal(k_emb, (vocab, E), dtype=jnp.float32)
    x_tokens = jax.random.randint(k_tok, (B, L), 0, vocab, dtype=jnp.int32)

    conv_weights, conv_biases = [], []
    for idx, n in enumerate(filter_list):
        kw, kb = k_params[2 * idx], k_params[2 * idx + 1]
        fan_in = 1 * n * E
        bound = 1.0 / (fan_in ** 0.5)   # PyTorch Conv2d default-init-like bound
        conv_weights.append(
            jax.random.uniform(kw, (num_filters, 1, n, E), jnp.float32, -bound, bound))
        conv_biases.append(
            jax.random.uniform(kb, (num_filters,), jnp.float32, -bound, bound))

    out = multitask_convnet_forward(x_tokens, embed_matrix, conv_weights,
                                    conv_biases, filter_list)
    out = jax.block_until_ready(out)

    ref = _reference(x_tokens, embed_matrix, conv_weights, conv_biases, filter_list)
    assert out.shape == (B, num_filters * len(filter_list)), out.shape
    assert jnp.allclose(out, ref, atol=2e-3, rtol=2e-3), "mismatch vs reference"
    print("KERNEL_OK")
</pallas_src>

<mosaic_0001>
module attributes {stable_mosaic.version = 11 : i64} {
  func.func @_fused_conv_kernel(%arg0: i32, %arg1: memref<1x32x32xbf16, #tpu.memory_space<vmem>>, %arg2: memref<160x128xbf16, #tpu.memory_space<vmem>>, %arg3: memref<1x128xf32, #tpu.memory_space<vmem>>, %arg4: memref<1x128xi32, #tpu.memory_space<vmem>>, %arg5: memref<1x1x128xf32, #tpu.memory_space<vmem>>) attributes {dimension_semantics = [#tpu.dimension_semantics<parallel>], iteration_bounds = array<i64: 2>, scalar_prefetch = 0 : i64, scratch_operands = 0 : i64, tpu.core_type = #tpu.core_type<tc>, window_params = [{transform_indices = @transform_0, window_bounds = array<i64: 1, 32, 32>}, {pipeline_mode = #tpu.pipeline_mode<synchronous>, transform_indices = @transform_1, window_bounds = array<i64: 160, 128>}, {pipeline_mode = #tpu.pipeline_mode<synchronous>, transform_indices = @transform_2, window_bounds = array<i64: 1, 128>}, {pipeline_mode = #tpu.pipeline_mode<synchronous>, transform_indices = @transform_3, window_bounds = array<i64: 1, 128>}, {transform_indices = @transform_4, window_bounds = array<i64: 1, 1, 128>}]} {
    %c0 = arith.constant 0 : index
    %c0_0 = arith.constant 0 : index
    %c0_1 = arith.constant 0 : index
    %0 = vector.load %arg1[%c0, %c0_0, %c0_1] : memref<1x32x32xbf16, #tpu.memory_space<vmem>>, vector<1x32x32xbf16>
    %1 = vector.extract_strided_slice %0 {offsets = [0, 0, 0], sizes = [1, 16, 32], strides = [1, 1, 1]} : vector<1x32x32xbf16> to vector<1x16x32xbf16>
    %2 = vector.extract_strided_slice %0 {offsets = [0, 1, 0], sizes = [1, 16, 32], strides = [1, 1, 1]} : vector<1x32x32xbf16> to vector<1x16x32xbf16>
    %3 = vector.extract_strided_slice %0 {offsets = [0, 2, 0], sizes = [1, 16, 32], strides = [1, 1, 1]} : vector<1x32x32xbf16> to vector<1x16x32xbf16>
    %4 = vector.extract_strided_slice %0 {offsets = [0, 3, 0], sizes = [1, 16, 32], strides = [1, 1, 1]} : vector<1x32x32xbf16> to vector<1x16x32xbf16>
    %5 = vector.extract_strided_slice %0 {offsets = [0, 4, 0], sizes = [1, 16, 32], strides = [1, 1, 1]} : vector<1x32x32xbf16> to vector<1x16x32xbf16>
    %6 = tpu.concatenate %1, %2, %3, %4, %5 in 2 : vector<1x16x32xbf16>, vector<1x16x32xbf16>, vector<1x16x32xbf16>, vector<1x16x32xbf16>, vector<1x16x32xbf16> -> vector<1x16x160xbf16>
    %7 = vector.shape_cast %6 : vector<1x16x160xbf16> to vector<16x160xbf16>
    %c0_2 = arith.constant 0 : index
    %c0_3 = arith.constant 0 : index
    %8 = vector.load %arg2[%c0_2, %c0_3] : memref<160x128xbf16, #tpu.memory_space<vmem>>, vector<160x128xbf16>
    %cst = arith.constant dense<0.000000e+00> : vector<16x128xf32>
    %9 = tpu.matmul %7, %8, %cst {dimension_numbers = #tpu.dot_dimension_numbers<[1], [0], [0], [1], [0, 0, 1, 1], [], []>} : vector<16x160xbf16>, vector<160x128xbf16>, vector<16x128xf32> -> vector<16x128xf32>
    %c0_4 = arith.constant 0 : index
    %c0_5 = arith.constant 0 : index
    %10 = vector.load %arg3[%c0_4, %c0_5] : memref<1x128xf32, #tpu.memory_space<vmem>>, vector<1x128xf32>
    %11 = vector.broadcast %10 : vector<1x128xf32> to vector<16x128xf32>
    %12 = arith.addf %9, %11 : vector<16x128xf32>
    %cst_6 = arith.constant 0.000000e+00 : f32
    %13 = vector.broadcast %cst_6 : f32 to vector<16x128xf32>
    %14 = arith.maximumf %12, %13 : vector<16x128xf32>
    %15 = vector.shape_cast %14 : vector<16x128xf32> to vector<1x16x128xf32>
    %16 = tpu.iota {dimensions = array<i32: 1>} : vector<1x16x128xi32>
    %c0_7 = arith.constant 0 : index
    %c0_8 = arith.constant 0 : index
    %17 = vector.load %arg4[%c0_7, %c0_8] : memref<1x128xi32, #tpu.memory_space<vmem>>, vector<1x128xi32>
    %18 = vector.shape_cast %17 : vector<1x128xi32> to vector<1x1x128xi32>
    %19 = vector.broadcast %18 : vector<1x1x128xi32> to vector<1x16x128xi32>
    %20 = arith.cmpi sle, %16, %19 : vector<1x16x128xi32>
    %cst_9 = arith.constant 0.000000e+00 : f32
    %21 = vector.broadcast %cst_9 : f32 to vector<1x16x128xf32>
    %22 = arith.select %20, %15, %21 : vector<1x16x128xi1>, vector<1x16x128xf32>
    %cst_10 = arith.constant dense<0xFF800000> : vector<1x128xf32>
    %23 = vector.multi_reduction <maximumf>, %22, %cst_10 [1] : vector<1x16x128xf32> to vector<1x128xf32>
    %c0_11 = arith.constant 0 : index
    %c0_12 = arith.constant 0 : index
    %c0_13 = arith.constant 0 : index
    %24 = vector.load %arg5[%c0_11, %c0_12, %c0_13] : memref<1x1x128xf32, #tpu.memory_space<vmem>>, vector<1x1x128xf32>
    %25 = vector.shape_cast %24 : vector<1x1x128xf32> to vector<1x128xf32>
    %26 = vector.shape_cast %23 : vector<1x128xf32> to vector<1x1x128xf32>
    tpu.vector_store %arg5[%c0_11, %c0_12, %c0_13], %26 {strides = array<i32>} : memref<1x1x128xf32, #tpu.memory_space<vmem>>, vector<1x1x128xf32>,
    return
  }
  func.func @transform_0(%arg0: i32) -> (i32, i32, i32) {
    %c0_i32 = arith.constant 0 : i32
    %c0_i32_0 = arith.constant 0 : i32
    %c0_i32_1 = arith.constant 0 : i32
    return %arg0, %c0_i32, %c0_i32_0 : i32, i32, i32
  }
  func.func @transform_1(%arg0: i32) -> (i32, i32) {
    %c0_i32 = arith.constant 0 : i32
    %c0_i32_0 = arith.constant 0 : i32
    %c0_i32_1 = arith.constant 0 : i32
    return %c0_i32, %c0_i32_0 : i32, i32
  }
  func.func @transform_2(%arg0: i32) -> (i32, i32) {
    %c0_i32 = arith.constant 0 : i32
    %c0_i32_0 = arith.constant 0 : i32
    %c0_i32_1 = arith.constant 0 : i32
    return %c0_i32, %c0_i32_0 : i32, i32
  }
  func.func @transform_3(%arg0: i32) -> (i32, i32) {
    %c0_i32 = arith.constant 0 : i32
    %c0_i32_0 = arith.constant 0 : i32
    %c0_i32_1 = arith.constant 0 : i32
    return %c0_i32, %c0_i32_0 : i32, i32
  }
  func.func @transform_4(%arg0: i32) -> (i32, i32, i32) {
    %c0_i32 = arith.constant 0 : i32
    %c0_i32_0 = arith.constant 0 : i32
    %c0_i32_1 = arith.constant 0 : i32
    return %arg0, %c0_i32, %c0_i32_0 : i32, i32, i32
  }
}

</mosaic_0001>

<bundles_post_ra>
// kernel: tpu_custom_call.1
= control target key start
LH: loop header
LB: loop body
LE: loop exit
PB: predicated region body
PF: predicated region fallthrough
CT: control target
= control target key end

     0   :  { %9 = vsyncpa [#allocation3], 0  ;;  %s1034_s0 = inlined_call_operand.hbm [shape: bf16[2,32,32], index: 0, kind: input, shape index: {}]   ;;  %s1035_s1 = inlined_call_operand.hbm [shape: bf16[160,128], index: 1, kind: input, shape index: {}]   ;;  %s1036_s2 = inlined_call_operand.vmem [shape: f32[1,128], index: 2, kind: input, shape index: {}]   ;;  %s1037_s3 = inlined_call_operand.vmem [shape: s32[1,128], index: 3, kind: input, shape index: {}]   ;;  %s1038_s4 = inlined_call_operand.hbm [shape: f32[2,1,128], index: 4, kind: output, shape index: {}]  }
   0x1   :  { %11 = vsyncpa [#allocation3 + $0x1], 0 }
   0x2   :  { %12 = vsyncpa [#allocation6], 0 }
   0x3   :  { %13 = vsyncpa [#allocation4], 0 }
   0x4   :  { %15 = vsyncpa [#allocation4 + $0x1], 0  ;;  %s799_s15 = smov 0   ;;  %s801_s16 = smov 0  }
   0x5   :  { %s803_s17 = smov 0   ;;  %s805_s18 = smov 0  }
   0x6 LB: > { %s820_s19 = sadd.s32 4294967295, %s763_s18   ;;  %s531_s20 = sadd.s32 4294967294, %s763_s18   ;;  %s763_s18 = sphi %s805_s18, %s1058_s18   ;;  %s759_s17 = sphi %s803_s17, %s1057_s17   ;;  %s755_s16 = sphi %s801_s16, %s1056_s16   ;;  %s751_s15 = sphi %s799_s15, %s1055_s15  }
   0x7   : > { %p41_p0 = scmp.ne.s32.totalorder %s755_s16, %s751_s15  ;;  %p1039_p1 = scmp.eq.s32.totalorder %s820_s19, 0 }
   0x8   : > { %p134_p3 = scmp.eq.s32.totalorder %s531_s20, 1  ;;  %p532_p5 = scmp.ge.s32.totalorder %s763_s18, 1 }
   0x9   : > { %p829_p4 = por %p1039_p1, %p41_p0  ;;  %p141_p7 = scmp.lt.s32.totalorder %s763_s18, 3 }
   0xa   : > { %p834_p6 = por %p134_p3, %p41_p0  ;;  %s765_s24 = smov [#allocation5]  }
   0xb   : > { %s1042_s21 = scalar_select %p829_p4, 1, 0 }
   0xc   : > { %s1043_s22 = scalar_select %p834_p6, 1, 0 }
   0xd   : > { %p839_p8 = pnand %p532_p5, %p141_p7  ;;  %s153_s25 = sshll.u32 %s765_s24, 4  ;;  %s843_s25 = int_to_ptr.vmem [resolvable:$true] %s153_s25 }
   0xe   : > { %s855_s27 = sadd.s32 1, %s763_s18   ;;  %s28_s28 = sadd.s32 1, %s759_s17 }
   0xf   : > { %s1044_s23 = scalar_select %p839_p8, 1, 0 }
  0x10   : > { %p568_p9 = pneg %p839_p8  ;;  %s25_s29 = ssub.s32 %s763_s18, %s855_s27 }
  0x11   : > { %s635_s6 = scalar_lea.hbm %s1035_s1, 1280 }
  0x12   : > { %p850_p11 = pnand %p568_p9, %p1039_p1  ;;  %p636_p12 = scmp.ne.s32.totalorder %s1035_s1, %s635_s6 }
  0x13   : > { %p642_p5 = scmp.lt.u32.totalorder %s635_s6, %s1035_s1 }
  0x14   : > { %p637_p13 = pneg %p850_p11 }
  0x16   : > { %p638_p0 = pnand %p637_p13, %p636_p12 }
  0x18   : > { %p639_p3 = pneg %p638_p0 }
  0x1a   : > { %p644_p7 = pnand %p642_p5, %p639_p3 }
  0x1c   : > { %647 = shalt.err (!%p644_p7)
}
  0x1d   : > { %s648_s11 = scalar_lea.vmem %s843_s25, 1280  ;;  %p656_p2 = scmp.lt.s32.totalorder %s843_s25, %s843_s25 }
  0x1e   : > { %p649_p9 = scmp.ne.s32.totalorder %s843_s25, %s648_s11  ;;  %p657_p6 = scmp.lt.s32.totalorder %s648_s11, %s648_s11 }
  0x20   : > { %p651_p10 = pnand %p649_p9, %p637_p13  ;;  %p658_p4 = por %p657_p6, %p656_p2 }
  0x22   : > { %p652_p1 = pneg %p651_p10 }
  0x24   : > { %p659_p8 = pnand %p658_p4, %p652_p1 }
  0x26   : > { %662 = shalt.err (!%p659_p8)
}
  0x27   : > { %s766_s12 = smov 64   ;;  %s767_s13 = smov 4  }
  0x28   : > { %571 = dma.hbm_to_vmem [thread:$0]  (!%p850_p11), %s1035_s1, 1280, %s843_s25, [#allocation6], %s766_s12, %s766_s12, %s767_s13  }
  0x29   : > { %p26_p1 = scmp.eq.s32.totalorder %s25_s29, 0  ;;  %p35_p2 = scmp.ne.s32.totalorder %s759_s17, %s755_s16 }
  0x2a   : > { %p36_p4 = scmp.eq.s32.totalorder %s763_s18, 0  ;;  %p581_p6 = scmp.lt.s32.totalorder %s763_s18, 2 }
  0x2b   : > { %s889_s24 = scalar_select %p26_p1, %s759_s17, %s28_s28  }
  0x2c   : > { %p37_p8 = por %p36_p4, %p35_p2  ;;  %p1046_p10 = scmp.eq.s32.totalorder %s820_s19, 1 }
  0x2d   : > { %s173_s26 = sand.u32 1, %s759_s17   ;;  %s559_s5 = sshll.u32 %s763_s18, 8 }
  0x2e   : > { %p893_p12 = por %p1046_p10, %p35_p2  ;;  %s535_s6 = sshll.u32 %s173_s26, 4 }
  0x2f   : > { %s902_s9 = scalar_lea.hbm %s1034_s0, %s559_s5  ;;  %s177_s25 = scalar_lea.vmem [#allocation2], %s535_s6 }
  0x30   : > { %s184_s28 = sshll.u32 %s177_s25, 4  ;;  %p904_p11 = pnand %p581_p6, %p37_p8  ;;  %s908_s28 = int_to_ptr.vmem [resolvable:$true] %s184_s28 }
  0x31   : > { %s910_s10 = scalar_lea.sflag [#allocation3], %s173_s26  ;;  %s663_s11 = scalar_lea.hbm %s902_s9, 256 }
  0x32   : > { %p664_p13 = scmp.ne.s32.totalorder %s902_s9, %s663_s11  ;;  %p665_p0 = pneg %p904_p11 }
  0x33   : > { %s668_s5 = scalar_lea.hbm %s1034_s0, 512  ;;  %p669_p7 = scmp.lt.u32.totalorder %s902_s9, %s1034_s0 }
  0x34   : > { %p666_p3 = pnand %p665_p0, %p664_p13  ;;  %p670_p9 = scmp.lt.u32.totalorder %s668_s5, %s663_s11 }
  0x35   : > { %p672_p2 = scmp.lt.u32.totalorder %s663_s11, %s902_s9 }
  0x36   : > { %p667_p5 = pneg %p666_p3  ;;  %p671_p1 = por %p670_p9, %p669_p7 }
  0x38   : > { %p673_p4 = por %p672_p2, %p671_p1 }
  0x3a   : > { %p674_p6 = pnand %p673_p4, %p667_p5 }
  0x3c   : > { %677 = shalt.err (!%p674_p6)
}
  0x3d   : > { %s678_s26 = scalar_lea.vmem %s908_s28, 256  ;;  %s768_s8 = smov [#allocation2]  }
  0x3e   : > { %p679_p8 = scmp.ne.s32.totalorder %s908_s28, %s678_s26  ;;  %s683_s25 = sshll.u32 %s768_s8, 4  ;;  %s684_s25 = int_to_ptr.vmem [resolvable:$false] %s683_s25 }
  0x3f   : > { %s685_s14 = scalar_lea.vmem %s684_s25, 512  ;;  %p686_p3 = scmp.lt.s32.totalorder %s908_s28, %s684_s25 }
  0x40   : > { %p681_p10 = pnand %p679_p8, %p665_p0  ;;  %p687_p7 = scmp.lt.s32.totalorder %s685_s14, %s678_s26 }
  0x42   : > { %p682_p13 = pneg %p681_p10  ;;  %p688_p9 = por %p687_p7, %p686_p3 }
  0x44   : > { %p689_p1 = pnand %p688_p9, %p682_p13 }
  0x46   : > { %692 = shalt.err (!%p689_p1)
}
  0x47   : > { %575 = dma.hbm_to_vmem [thread:$0]  (!%p904_p11), %s902_s9, 256, %s908_s28, %s910_s10, %s766_s12, %s766_s12, %s767_s13  }
  0x48   : > { %p1049_p0 = scmp.ne.s32.totalorder %s1044_s23, 0 }
  0x49   : > { %s944_s11 = sand.u32 (!%p1049_p0), 1, %s755_s16   ;;  %p1050_p5 = scmp.ne.s32.totalorder (!%p1049_p0), %s1042_s21, 0 }
  0x4a   : > { %196 = sbr.rel (%p1049_p0) target bundleno = 462 (0x1ce), region = 36  ;;  %s539_s20 = sshll.u32 (!%p1049_p0), %s944_s11, 4 }
  0x4b   : > { %s199_s5 = scalar_lea.sflag (!%p1049_p0), [#allocation3], %s944_s11  ;;  %s202_s6 = scalar_lea.vmem (!%p1049_p0), [#allocation2], %s539_s20 }
  0x51   : > { %738 = dma.done.wait (%p1050_p5), %s199_s5, 256  }
  0x52   : > { %740 = vsyncadd (%p1050_p5), %s199_s5, 4294967040  ;;  %p1051_p2 = scmp.eq.s32.totalorder %s820_s19, 0 }
  0x54   : > { %742 = dma.done.wait (%p1051_p2), [#allocation6], 1280   ;;  %p1052_p11 = pmov %p1051_p2 }
  0x55   : > { %v769_v0 = vmov 0   ;;  %vm242_vm0 = vsmask.f32 7424  ;;  %vm263_vm1 = vsmask.f32 6400  ;;  %v957_v1 = vld [vmem:[%s202_s6] sm:$0xff]   ;;  %v422_v40 = vlaneseq }
  0x56   : > { %744 = vsyncadd (%p1052_p11), [#allocation6], 4294966016  ;;  %379 = vmatprep.subr.bf16.mxu0 %v769_v0  ;;  %v624_v2 = vld [vmem:[%s202_s6 + $0x8] ss:$0 sps:$4 sm:$0xff]   ;;  %vm257_vm2 = vcmask 1046528   ;;  %v625_v3 = vld [vmem:[#allocation5] sm:$0xff]  }
  0x57   : > { %v244_v4 = vshrl.u32 %v957_v1, 16  ;;  %v246_v5 = vshll.u32 %v957_v1, 16  ;;  %v251_v6 = vshll.u32 %v624_v2, 16  ;;  %v258_v7 = vrot.slane %v957_v1, 1  ;;  %380 = vmatpush1.bf16.msra.mxu0 %v625_v3  ;;  %v626_v9 = vld [vmem:[#allocation5 + $0x8] sm:$0xff]   ;;  %v627_v21 = vld [vmem:[#allocation5 + $0x10] sm:$0xff]  }
  0x58   : > { %v267_v8 = vshrl.u32 %v624_v2, 16  ;;  %vm275_vm3 = vcmask 1045504   ;;  %381 = vmatprep.subr.bf16.mxu0 %v769_v0  ;;  %v259_v17 = vrot.slane %v624_v2, 1  ;;  %v276_v19 = vrot.slane %v957_v1, 2  ;;  %s770_s21 = smov 32   ;;  %s771_s23 = smov 96  }
  0x59   : > { %v248_v10 = vrot.slane %v246_v5, 1  ;;  %v253_v11 = vrot.slane %v251_v6, 1  ;;  %v264_v12 = vrot.slane %v244_v4, 1  ;;  %v265_v13 = vrot.slane %v246_v5, 2  ;;  %v628_v27 = vld [vmem:[#allocation5 + $0x18] sm:$0xff]   ;;  %s772_s12 = smov 64  }
  0x5a   : > { %v269_v14 = vrot.slane %v267_v8, 1  ;;  %v270_v15 = vrot.slane %v251_v6, 2  ;;  %v277_v22 = vrot.slane %v624_v2, 2  ;;  %vm279_vm4 = vcmask 261120   ;;  %v629_v28 = vld [vmem:[#allocation5 + $0x20] sm:$0xff]   ;;  %v630_v29 = vld [vmem:[#allocation5 + $0x28] sm:$0xff]  }
  0x5b   : > { %v249_v16 = vor.u32 %v248_v10, %v244_v4  ;;  %v266_v18 = vor.u32 %v265_v13, %v264_v12  ;;  %382 = vmatpush1.bf16.msra.mxu0 %v626_v9  ;;  %v260_v26 = vsel %vm257_vm2, %v258_v7, %v259_v17  ;;  %v631_v30 = vld [vmem:[#allocation5 + $0x30] sm:$0xff]   ;;  %v632_v31 = vld [vmem:[#allocation5 + $0x38] sm:$0xff]   ;;  %v633_v32 = vld [vmem:[#allocation5 + $0x40] sm:$0xff]   ;;  %vm282_vm5 = vcmask 523264   ;;  %s556_s10 = sshll.u32 %s820_s19, 4  ;;  %s229_s7 = scalar_lea.vmem [#allocation7], %s944_s11 }
  0x5c   : > { %v271_v20 = vor.u32 %v270_v15, %v269_v14  ;;  %383 = vmatprep.subr.bf16.mxu0 %v769_v0  ;;  %v278_v25 = vsel %vm275_vm3, %v276_v19, %v277_v22  ;;  %v634_v33 = vld [vmem:[#allocation5 + $0x48] sm:$0xff]   ;;  %vm285_vm6 = vcmask 785408   ;;  %v423_v41 = vshrl.u32 %v422_v40, 7  ;;  %v543_v42 = vld [vmem:[%s1036_s2] ss:$0 sm:$0xff]  ;;  %s455_s26 = sshll.u32 %s229_s7, 4  ;;  %s990_s14 = scalar_lea.hbm %s1038_s4, %s556_s10  ;;  %s992_s26 = int_to_ptr.vmem [resolvable:$true] %s455_s26 }
  0x5d   : > { %v254_v23 = vsel %vm242_vm0, %v249_v16, %v253_v11  ;;  %554 = vmatprep.mubr.msk.bf16.mxu0 %vm279_vm4, %v278_v25  ;;  %v555_v46 = vld [vmem:[%s1037_s3] ss:$0 sm:$0xff]  ;;  %s443_s20 = scalar_lea.sflag [#allocation4], %s944_s11  ;;  %s693_s5 = scalar_lea.vmem %s992_s26, 16 }
  0x5e   : > { %255 = vrot.lane.b32.xlu0 %v254_v23, %s770_s21  ;;  %v272_v24 = vsel %vm263_vm1, %v266_v18, %v271_v20  ;;  %v424_v44 = vadd.s32 8, %v423_v41  ;;  %vm430_vm7 = vcmp.le.s32.totalorder %v423_v41, %v555_v46  ;;  %p694_p4 = scmp.ne.s32.totalorder %s992_s26, %s693_s5  ;;  %s773_s19 = smov [#allocation7]  }
  0x5f   : > { %273 = vrot.lane.b32.xlu1 %v272_v24, %s771_s23  ;;  %384 = vmatpush1.bf16.msra.mxu0 %v627_v21  ;;  %s697_s6 = sshll.u32 %s773_s19, 4  ;;  %s698_s6 = int_to_ptr.vmem [resolvable:$false] %s697_s6 }
  0x60   : > { %385 = vmatprep.subr.bf16.mxu0 %v769_v0  ;;  %vm431_vm8 = vcmp.le.s32.totalorder %v424_v44, %v555_v46  ;;  %p695_p6 = pnand %p694_p4, %p893_p12  ;;  %s699_s21 = scalar_lea.vmem %s698_s6, 32 }
  0x61   : > { %p700_p10 = scmp.lt.s32.totalorder %s992_s26, %s698_s6  ;;  %p701_p13 = scmp.lt.s32.totalorder %s699_s21, %s693_s5 }
  0x62   : > { %261 = vrot.lane.b32.xlu0 %v260_v26, %s772_s12  ;;  %p696_p8 = pneg %p695_p6 }
  0x63   : > { %386 = vmatpush1.bf16.msra.mxu0 %v628_v27  ;;  %p702_p3 = por %p701_p13, %p700_p10 }
  0x64   : > { %387 = vmatprep.subr.bf16.mxu0 %v769_v0 }
  0x65   : > { %p703_p7 = pnand %p702_p3, %p696_p8 }
  0x67   : > { %388 = vmatpush1.bf16.msra.mxu0 %v629_v28 }
  0x68   : > { %389 = vmatprep.subr.bf16.mxu0 %v769_v0 }
  0x6b   : > { %390 = vmatpush1.bf16.msra.mxu0 %v630_v29 }
  0x6c   : > { %391 = vmatprep.subr.bf16.mxu0 %v769_v0 }
  0x6f   : > { %392 = vmatpush1.bf16.msra.mxu0 %v631_v30 }
  0x70   : > { %393 = vmatprep.subr.bf16.mxu0 %v769_v0 }
  0x73   : > { %394 = vmatpush1.bf16.msra.mxu0 %v632_v31 }
  0x74   : > { %395 = vmatprep.subr.bf16.mxu0 %v769_v0 }
  0x77   : > { %396 = vmatpush1.bf16.msra.mxu0 %v633_v32 }
  0x78   : > { %397 = vmatprep.subr.bf16.mxu0 %v769_v0 }
  0x7b   : > { %398 = vmatpush1.bf16.msra.mxu0 %v634_v33 }
  0xd0   : > { %v256_v34 = vpop.permute.xlu0 %255 }
  0xd1   : > { %v274_v35 = vpop.permute.xlu1 %273  ;;  %v281_v37 = vsel %vm279_vm4, %v957_v1, %v256_v34 }
  0xd4   : > { %v262_v36 = vpop.permute.xlu0 %261 }
  0xd5   : > { %v284_v38 = vsel %vm282_vm5, %v281_v37, %v262_v36 }
  0xd6   : > { %v287_v39 = vsel %vm285_vm6, %v284_v38, %v274_v35 }
  0xd7   : > { %412 = vmatmul.mubr.bf16.vlgmr.msra.gmra.mrb[0].mxu0 %v287_v39 }
 0x1aa   : > { %v413_v43 = vpop.f32.mrb[0].mxu0 }
 0x1ab   : > { %v414_v45 = vadd.f32 %v543_v42, %v413_v43  ;;  %v415_v47 = vpop.f32.mrb[1].mxu0 }
 0x1ac   : > { %v416_v48 = vpop.f32.mrb[2].mxu0 }
 0x1ad   : > { %v420_v49 = vmax.f32 %v414_v45, 0.0  ;;  %v417_v50 = vadd.f32 %v543_v42, %v416_v48  ;;  %v418_v51 = vpop.f32.mrb[3].mxu0 }
 0x1af   : > { %v421_v52 = vmax.f32 %v417_v50, 0.0  ;;  %v432_v53 = vsel %vm430_vm7, %v420_v49, 0.0 }
 0x1b1   : > { %v433_v54 = vsel %vm431_vm8, %v421_v52, 0.0 }
 0x1b2   : > { %v434_v55 = vmax.f32 %v432_v53, %v433_v54 }
 0x1b4   : > { %v435_v56 = vrot.slane %v434_v55, 4 }
 0x1b6   : > { %v436_v57 = vmax.f32 %v434_v55, %v435_v56 }
 0x1b8   : > { %v437_v58 = vrot.slane %v436_v57, 2 }
 0x1ba   : > { %v438_v59 = vmax.f32 %v436_v57, %v437_v58 }
 0x1bc   : > { %v439_v60 = vrot.slane %v438_v59, 1 }
 0x1be   : > { %v440_v61 = vmax.f32 %v438_v59, %v439_v60 }
 0x1c0   : > { %441 = vst [vmem:[%s229_s7] sm:$0x1] %v440_v61 }
 0x1c1   : > { %706 = shalt.err (!%p703_p7)
}
 0x1c2   : > { %s707_s11 = scalar_lea.hbm %s990_s14, 16  ;;  %s711_s13 = scalar_lea.hbm %s1038_s4, 32 }
 0x1c3   : > { %p708_p9 = scmp.ne.s32.totalorder %s990_s14, %s707_s11  ;;  %p712_p5 = scmp.lt.u32.totalorder %s990_s14, %s1038_s4 }
 0x1c4   : > { %p713_p2 = scmp.lt.u32.totalorder %s711_s13, %s707_s11  ;;  %p715_p4 = scmp.lt.u32.totalorder %s707_s11, %s990_s14 }
 0x1c5   : > { %p709_p1 = pnand %p708_p9, %p893_p12 }
 0x1c6   : > { %p714_p11 = por %p713_p2, %p712_p5 }
 0x1c7   : > { %p710_p0 = pneg %p709_p1 }
 0x1c8   : > { %p716_p6 = por %p715_p4, %p714_p11 }
 0x1ca   : > { %p717_p8 = pnand %p716_p6, %p710_p0 }
 0x1cc   : > { %720 = shalt.err (!%p717_p8)
}
 0x1cd   : > { %566 = dma.vmem_to_hbm [thread:$0]  (%p893_p12), %s992_s26, 16, %s990_s14, %s443_s20  }
 0x1ce PF: > { %s467_s29 = sand.u32 1, %s751_s15   ;;  %p1053_p10 = scmp.ne.s32.totalorder %s1043_s22, 0 }
 0x1cf   : > { %p1054_p13 = scmp.ge.s32.totalorder %s763_s18, 2  ;;  %s468_s10 = scalar_lea.sflag [#allocation4], %s467_s29 }
 0x1d1   : > { %p577_p3 = pnand %p1054_p13, %p1053_p10 }
 0x1d3   : > { %746 = dma.done.wait (!%p577_p3), %s468_s10, 16  }
 0x1d4   : > { %748 = vsyncadd (!%p577_p3), %s468_s10, 4294967280  ;;  %p18_p7 = scmp.ge.s32.totalorder %s855_s27, 4   ;;  %s1055_s15 = smov %s755_s16 }
 0x1d5   : > { %s1056_s16 = smov %s759_s17  ;;  %s1057_s17 = smov %s889_s24 }
 0x1d6   : > { %s1058_s18 = smov %s855_s27  ;;  %20 = sbr.rel (!%p18_p7) target bundleno = 6 (0x6), region = 85 }
 0x1dd   :  { %472 = vsyncpa [#allocation3], 1 }
 0x1de   :  { %474 = vsyncpa [#allocation3 + $0x1], 1 }
 0x1df   :  { %475 = vsyncpa [#allocation6], 1 }
 0x1e0   :  { %476 = vsyncpa [#allocation4], 1 }
 0x1e1   :  { %478 = vsyncpa [#allocation4 + $0x1], 1 }

</bundles_post_ra>
